<compile_context>
chip_gen: v5e
topology: v5e:2x2
jax: 0.10.0
libtpu: 0.0.40
codegen_flags: <defaults>
</compile_context>

<pallas_src>
import math

import jax
import jax.numpy as jnp
from jax.experimental import pallas as pl
from jax.experimental.pallas import tpu as pltpu


_VMEM_LIMIT_BYTES = 32 * 1024 * 1024   # explicit scoped-VMEM limit (v5e default is only 16 MiB)
_X_BUFFER_BUDGET = 8 * 1024 * 1024     # bytes per storage-tile buffer (pipeline double-buffers it)
_MAX_S_TILE = 2048                     # reduction-axis chunk when S is large


def _round_up(x, m):
    return (x + m - 1) // m * m


def _pick_s_tile(S):
    """Reduction-axis tile: full S when small, else a multiple-of-128 divisor of S."""
    if S <= _MAX_S_TILE:
        return S
    for st in range(_MAX_S_TILE - _MAX_S_TILE % 128, 127, -128):
        if S % st == 0:
            return st
    # TODO(synk): very large S with no multiple-of-128 divisor falls back to an
    # untiled S block, which may exceed the VMEM budget.
    return S


def _pick_batch_tile(B, s_tile):
    """Batch-axis tile from a VMEM byte budget (f32 rows are lane-padded to 128)."""
    row_bytes = _round_up(s_tile, 128) * 4
    cap = max(128, (_X_BUFFER_BUDGET // row_bytes) // 128 * 128)
    if B <= cap:
        if B <= 256:
            return B                                    # single full block (e.g. the demo)
        # >= 2 grid steps so the "parallel" axis can shard across v7x's 2 TensorCores.
        return min(cap, _round_up((B + 1) // 2, 128))
    return cap


def nalu_alu_kernel(bias_ref, x_ref, ws_ref, wt_ref, o_ref):
    s_idx = pl.program_id(1)

    # control row: sigmoid(W_sig) + tanh(W_tanh), shape (1, S_t).  EUP work
    # that hides under the HBM-bound pipeline.
    control = jax.nn.sigmoid(ws_ref[...]) + jnp.tanh(wt_ref[...])

    # (1, S_t) . (Bt, S_t)^T -> (1, Bt): the MXU does the S-reduction and the
    # result is already a lane-dense row (no lane-width-1 masked stores).
    partial = jax.lax.dot_general(
        control, x_ref[...],
        dimension_numbers=(((1,), (1,)), ((), ())),
        preferred_element_type=jnp.float32)

    # The output block index depends only on the batch axis, so the block stays
    # resident across the trailing "arbitrary" S axis and doubles as the f32
    # accumulator.
    @pl.when(s_idx == 0)
    def _():
        o_ref[...] = bias_ref[0] + partial

    @pl.when(s_idx > 0)
    def _():
        o_ref[...] = o_ref[...] + partial


def nalu_alu_forward(storage, w_sigmoid, w_tanh, bias):
    """Pallas implementation of NALU_ALU.forward.

    storage:   (B, S) float32
    w_sigmoid: (S, 1) float32   (module's `self.sigmoid` parameter)
    w_tanh:    (S, 1) float32   (module's `self.tanh` parameter)
    bias:      (1,)   float32
    returns:   (B, 1) float32
    """
    B, S = storage.shape
    assert w_sigmoid.shape == (S, 1) and w_tanh.shape == (S, 1)
    assert bias.shape == (1,)

    # Free layout plumbing: (S, 1) parameter columns become lane-dense rows.
    ws_row = w_sigmoid.reshape(1, S)
    wt_row = w_tanh.reshape(1, S)

    s_t = _pick_s_tile(S)
    bt = _pick_batch_tile(B, s_t)
    grid_b = pl.cdiv(B, bt)
    grid_s = S // s_t  # s_t == S or divides S by construction
    # TODO(synk): for S < 128 (e.g. S=32) every storage vreg is still 75% lane
    # padding; packing 128//S batch rows per lane row would recover VMEM/vld
    # capacity but needs a segmented reduce + output reorder, not done here.

    cost = pl.CostEstimate(
        flops=2 * B * S,
        transcendentals=2 * S * grid_b,
        bytes_accessed=4 * B * S + 4 * B + 8 * S + 4,
    )

    out_row = pl.pallas_call(
        nalu_alu_kernel,
        out_shape=jax.ShapeDtypeStruct((1, B), jnp.float32),
        grid=(grid_b, grid_s),                                  # reduction axis last
        in_specs=[
            pl.BlockSpec(memory_space=pltpu.SMEM),              # bias scalar
            pl.BlockSpec((bt, s_t), lambda i, s: (i, s)),       # storage batch tile
            pl.BlockSpec((1, s_t), lambda i, s: (0, s)),        # sigmoid param row
            pl.BlockSpec((1, s_t), lambda i, s: (0, s)),        # tanh param row
        ],
        out_specs=pl.BlockSpec((1, bt), lambda i, s: (0, i)),   # lane-dense output row
        compiler_params=pltpu.CompilerParams(
            dimension_semantics=("parallel", "arbitrary"),
            vmem_limit_bytes=_VMEM_LIMIT_BYTES,
        ),
        cost_estimate=cost,
    )(bias, storage, ws_row, wt_row)

    return out_row.reshape(B, 1)   # free contiguous reshape back to (B, 1)


def xavier_normal(key, shape):
    fan_in, fan_out = shape[0], shape[1]
    std = math.sqrt(2.0 / (fan_in + fan_out))
    return std * jax.random.normal(key, shape, dtype=jnp.float32)


def nalu_alu_reference(storage, w_sigmoid, w_tanh, bias):
    control = jax.nn.sigmoid(w_sigmoid) + jnp.tanh(w_tanh)   # (S, 1)
    return bias + storage @ control                          # (B, 1)


def _assert_close(out, ref, tol=2e-2):
    # Tolerance is chosen to also cover the case where the MXU evaluates the
    # f32 contraction with reduced-precision (bf16) passes under default
    # matmul precision; with exact f32 the error is ~1e-6.
    err = float(jnp.max(jnp.abs(out - ref)) / (jnp.max(jnp.abs(ref)) + 1e-6))
    assert err < tol, (err, out, ref)


if __name__ == "__main__":
    key = jax.random.PRNGKey(0)

    # Primary demo at small shapes consistent with the module:
    # storage_size=32, batch=8 (redundancy is a constructor arg unused by forward).
    B = 8
    storage_size = 32
    redundancy = 4

    k_x, k_s, k_t = jax.random.split(key, 3)
    storage = jax.random.normal(k_x, (B, storage_size), dtype=jnp.float32)
    w_sigmoid = xavier_normal(k_s, (storage_size, 1))
    w_tanh = xavier_normal(k_t, (storage_size, 1))
    # Nonzero bias (any parameter value is valid) so the bias path is exercised.
    bias = jnp.full((1,), 0.25, dtype=jnp.float32)

    out = jax.block_until_ready(nalu_alu_forward(storage, w_sigmoid, w_tanh, bias))
    ref = nalu_alu_reference(storage, w_sigmoid, w_tanh, bias)
    assert out.shape == (B, 1)
    _assert_close(out, ref)

    # Extra coverage of the tiled paths:
    #   (512, 64)  -> 2 "parallel" batch tiles (v7x megacore path)
    #   (96, 4096) -> 2 "arbitrary" S reduction tiles (resident-output accumulation)
    for (b2, s2) in ((512, 64), (96, 4096)):
        kx2, ks2, kt2, key = jax.random.split(key, 4)
        st2 = jax.random.normal(kx2, (b2, s2), dtype=jnp.float32)
        ws2 = xavier_normal(ks2, (s2, 1))
        wt2 = xavier_normal(kt2, (s2, 1))
        b2p = jnp.full((1,), 0.25, dtype=jnp.float32)
        o2 = jax.block_until_ready(nalu_alu_forward(st2, ws2, wt2, b2p))
        r2 = nalu_alu_reference(st2, ws2, wt2, b2p)
        assert o2.shape == (b2, 1)
        _assert_close(o2, r2)

    print("KERNEL_OK")
</pallas_src>

<mosaic_0001>
module attributes {stable_mosaic.version = 11 : i64} {
  func.func @nalu_alu_kernel(%arg0: i32, %arg1: i32, %arg2: memref<1xf32, #tpu.memory_space<smem>>, %arg3: memref<8x32xf32, #tpu.memory_space<vmem>>, %arg4: memref<1x32xf32, #tpu.memory_space<vmem>>, %arg5: memref<1x32xf32, #tpu.memory_space<vmem>>, %arg6: memref<1x8xf32, #tpu.memory_space<vmem>>) attributes {dimension_semantics = [#tpu.dimension_semantics<parallel>, #tpu.dimension_semantics<arbitrary>], iteration_bounds = array<i64: 1, 1>, scalar_prefetch = 0 : i64, scratch_operands = 0 : i64, tpu.core_type = #tpu.core_type<tc>, window_params = [{transform_indices = @transform_0, window_bounds = array<i64: 1>}, {transform_indices = @transform_1, window_bounds = array<i64: 8, 32>}, {transform_indices = @transform_2, window_bounds = array<i64: 1, 32>}, {transform_indices = @transform_3, window_bounds = array<i64: 1, 32>}, {transform_indices = @transform_4, window_bounds = array<i64: 1, 8>}]} {
    %c0 = arith.constant 0 : index
    %c0_0 = arith.constant 0 : index
    %0 = vector.load %arg4[%c0, %c0_0] : memref<1x32xf32, #tpu.memory_space<vmem>>, vector<1x32xf32>
    %1 = arith.negf %0 : vector<1x32xf32>
    %2 = math.exp %1 : vector<1x32xf32>
    %cst = arith.constant 1.000000e+00 : f32
    %3 = vector.broadcast %cst : f32 to vector<1x32xf32>
    %4 = arith.addf %3, %2 : vector<1x32xf32>
    %5 = arith.divf %3, %4 : vector<1x32xf32>
    %c0_1 = arith.constant 0 : index
    %c0_2 = arith.constant 0 : index
    %6 = vector.load %arg5[%c0_1, %c0_2] : memref<1x32xf32, #tpu.memory_space<vmem>>, vector<1x32xf32>
    %7 = math.tanh %6 : vector<1x32xf32>
    %8 = arith.addf %5, %7 : vector<1x32xf32>
    %c0_3 = arith.constant 0 : index
    %c0_4 = arith.constant 0 : index
    %9 = vector.load %arg3[%c0_3, %c0_4] : memref<8x32xf32, #tpu.memory_space<vmem>>, vector<8x32xf32>
    %cst_5 = arith.constant dense<0.000000e+00> : vector<1x8xf32>
    %10 = tpu.matmul %8, %9, %cst_5 {dimension_numbers = #tpu.dot_dimension_numbers<[1], [1], [0], [0], [0, 0, 1, 0], [], []>} : vector<1x32xf32>, vector<8x32xf32>, vector<1x8xf32> -> vector<1x8xf32>
    %c0_i32 = arith.constant 0 : i32
    %11 = arith.cmpi eq, %arg1, %c0_i32 : i32
    %12 = arith.extui %11 : i1 to i32
    %c0_i32_6 = arith.constant 0 : i32
    %13 = arith.cmpi ne, %12, %c0_i32_6 : i32
    scf.if %13 {
      %c0_9 = arith.constant 0 : index
      %17 = memref.load %arg2[%c0_9] : memref<1xf32, #tpu.memory_space<smem>>
      %18 = vector.broadcast %17 : f32 to vector<1x8xf32>
      %19 = arith.addf %18, %10 : vector<1x8xf32>
      %c0_10 = arith.constant 0 : index
      %c0_11 = arith.constant 0 : index
      %20 = vector.load %arg6[%c0_10, %c0_11] : memref<1x8xf32, #tpu.memory_space<vmem>>, vector<1x8xf32>
      tpu.vector_store %arg6[%c0_10, %c0_11], %19 {strides = array<i32>} : memref<1x8xf32, #tpu.memory_space<vmem>>, vector<1x8xf32>,
    } else {
    }
    %c0_i32_7 = arith.constant 0 : i32
    %14 = arith.cmpi sgt, %arg1, %c0_i32_7 : i32
    %15 = arith.extui %14 : i1 to i32
    %c0_i32_8 = arith.constant 0 : i32
    %16 = arith.cmpi ne, %15, %c0_i32_8 : i32
    scf.if %16 {
      %c0_9 = arith.constant 0 : index
      %c0_10 = arith.constant 0 : index
      %17 = vector.load %arg6[%c0_9, %c0_10] : memref<1x8xf32, #tpu.memory_space<vmem>>, vector<1x8xf32>
      %18 = arith.addf %17, %10 : vector<1x8xf32>
      %c0_11 = arith.constant 0 : index
      %c0_12 = arith.constant 0 : index
      %19 = vector.load %arg6[%c0_11, %c0_12] : memref<1x8xf32, #tpu.memory_space<vmem>>, vector<1x8xf32>
      tpu.vector_store %arg6[%c0_11, %c0_12], %18 {strides = array<i32>} : memref<1x8xf32, #tpu.memory_space<vmem>>, vector<1x8xf32>,
    } else {
    }
    return
  }
  func.func @transform_0(%arg0: i32, %arg1: i32) -> i32 {
    %c0_i32 = arith.constant 0 : i32
    %c0_i32_0 = arith.constant 0 : i32
    return %c0_i32 : i32
  }
  func.func @transform_1(%arg0: i32, %arg1: i32) -> (i32, i32) {
    %c0_i32 = arith.constant 0 : i32
    return %arg0, %arg1 : i32, i32
  }
  func.func @transform_2(%arg0: i32, %arg1: i32) -> (i32, i32) {
    %c0_i32 = arith.constant 0 : i32
    %c0_i32_0 = arith.constant 0 : i32
    return %c0_i32, %arg1 : i32, i32
  }
  func.func @transform_3(%arg0: i32, %arg1: i32) -> (i32, i32) {
    %c0_i32 = arith.constant 0 : i32
    %c0_i32_0 = arith.constant 0 : i32
    return %c0_i32, %arg1 : i32, i32
  }
  func.func @transform_4(%arg0: i32, %arg1: i32) -> (i32, i32) {
    %c0_i32 = arith.constant 0 : i32
    %c0_i32_0 = arith.constant 0 : i32
    return %c0_i32, %arg0 : i32, i32
  }
}

</mosaic_0001>

<bundles_post_ra>
// kernel: tpu_custom_call.1
= control target key start
LH: loop header
LB: loop body
LE: loop exit
PB: predicated region body
PF: predicated region fallthrough
CT: control target
= control target key end

     0   :  { %10 = vsyncpa [#allocation4], 0  ;;  %s225_s0 = inlined_call_operand.<no memory space> [shape: f32[1], index: 0, kind: input, shape index: {}]   ;;  %s226_s1 = inlined_call_operand.hbm [shape: f32[8,32], index: 1, kind: input, shape index: {}]   ;;  %s227_s2 = inlined_call_operand.vmem [shape: f32[1,32], index: 2, kind: input, shape index: {}]   ;;  %s228_s3 = inlined_call_operand.vmem [shape: f32[1,32], index: 3, kind: input, shape index: {}]   ;;  %s229_s4 = inlined_call_operand.hbm [shape: f32[1,8], index: 4, kind: output, shape index: {}]  }
   0x1   :  { %11 = vsyncpa [#allocation5], 0  ;;  %s19_s17 = sshll.u32 %s226_s1, 4  ;;  %s181_s18 = smov [#allocation3]   ;;  %s20_s17 = int_to_ptr.hbm [resolvable:$true] %s19_s17 }
   0x2   :  { %s21_s19 = sshll.u32 %s181_s18, 4  ;;  %s22_s19 = int_to_ptr.vmem [resolvable:$true] %s21_s19 }
   0x3   :  { %24 = dma.hbm_to_vmem [thread:$0]  %s20_s17, 128, %s22_s19, [#allocation4]  }
   0x4   :  { %177 = dma.done.wait [#allocation4], 128  }
   0x5   :  { %178 = vsyncadd [#allocation4], 4294967168  ;;  %vm57_vm0 = vcmask 261120   ;;  %v56_v0 = vld [vmem:[#allocation3] sm:$0xff]  ;;  %v89_v18 = vstv %s225_s0  ;;  %s182_s23 = smov [#allocation6]   ;;  %s108_s27 = sshll.u32 %s229_s4, 4  ;;  %s109_s27 = int_to_ptr.hbm [resolvable:$true] %s108_s27 }
   0x6   :  { %v33_v1 = vld [vmem:[%s227_s2] sm:$0x1]  ;;  %119 = vmatpush.xpose.msk.msra.mxu0 %vm57_vm0, %v56_v0  ;;  %s106_s24 = sshll.u32 %s182_s23, 4  ;;  %vm91_vm5 = vcmask 57344   ;;  %s107_s24 = int_to_ptr.vmem [resolvable:$true] %s106_s24 }
   0x7   :  { %v118_v2 = vmul.f32 -1.442695, %v33_v1  ;;  %v53_v5 = vld [vmem:[%s228_s3] sm:$0x1] }
   0x9   :  { %123 = vpow2.f32 %v118_v2 }
   0xf   :  { %v124_v3 = vpop.eup %123 }
  0x10   :  { %v37_v4 = vadd.f32 1.0, %v124_v3 }
  0x12   :  { %125 = vrcp.f32 %v37_v4  ;;  %v49_v8 = vand.u32 2147483648, %v37_v4  ;;  %vm43_vm1 = vweird.f32 %v37_v4  ;;  %v47_v10 = vand.u32 2147483647, %v37_v4 }
  0x13   :  { %127 = vtanh.f32 %v53_v5 }
  0x14   :  { %v50_v12 = vor.u32 1.1754944e-38, %v49_v8  ;;  %vm48_vm4 = vcmp.eq.f32.partialorder %v47_v10, 8.507059e+37 }
  0x18   :  { %v126_v6 = vpop.eup %125 }
  0x19   :  { %v39_v7 = vmul.f32 %v126_v6, %v37_v4  ;;  %vm44_vm2 = vweird.f32 %v126_v6  ;;  %v128_v14 = vpop.eup %127 }
  0x1a   :  { %vm45_vm3 = vmor %vm43_vm1, %vm44_vm2 }
  0x1b   :  { %v40_v9 = vsub.f32 1.0, %v39_v7 }
  0x1d   :  { %v41_v11 = vmul.f32 %v126_v6, %v40_v9 }
  0x1f   :  { %v42_v13 = vadd.f32 %v126_v6, %v41_v11 }
  0x21   :  { %v46_v15 = vsel %vm45_vm3, %v126_v6, %v42_v13 }
  0x22   :  { %v51_v16 = vsel %vm48_vm4, %v50_v12, %v46_v15 }
  0x23   :  { %v55_v17 = vadd.f32 %v128_v14, %v51_v16 }
  0x25   :  { %120 = vmatmul.msk.f32.vlgmr.msra.gmra.mxu0 %vm57_vm0, %v55_v17 }
  0xa2   :  { %v81_v19 = vpop.f32.mrf.mxu0 }
  0xa3   :  { %v90_v20 = vadd.f32 %v89_v18, %v81_v19 }
  0xa5   :  { %92 = vst.msk [vmem:[#allocation6] sm:$0x1] %vm91_vm5, %v90_v20 }
  0xa6   :  { %111 = dma.vmem_to_hbm [thread:$0]  %s107_s24, 16, %s109_s27, [#allocation5]  }
  0xa7   :  { %179 = dma.done.wait [#allocation5], 16  }
  0xa8   :  { %180 = vsyncadd [#allocation5], 4294967280 }
  0xa9   :  { %116 = vsyncpa [#allocation4], 1 }
  0xaa   :  { %117 = vsyncpa [#allocation5], 1 }

</bundles_post_ra>
